<compile_context>
chip_gen: v5e
topology: v5e:2x2
jax: 0.10.0
libtpu: 0.0.40
codegen_flags: <defaults>
</compile_context>

<pallas_src>
import functools

import jax
import jax.numpy as jnp
from jax.experimental import pallas as pl
from jax.experimental.pallas import tpu as pltpu


def textmlp_kernel(tok_ref, emb_tab_ref, w_in_ref, b_in_ref, w_mlp_ref,
                   b_mlp_ref, w_out_ref, b_out_ref, out_ref, *,
                   num_mlp, batch, seq_len, vocab):
    """Single invocation over the whole (flattened) batch.

    tok_ref:     (B*L, 1) int32   VMEM
    emb_tab_ref: (V, E)           VMEM-resident embedding table
    w_in_ref:    (E, H)           b_in_ref:  (1, H)
    w_mlp_ref:   (num_mlp, H, H)  b_mlp_ref: (num_mlp, 1, H)
    w_out_ref:   (H, 2)           b_out_ref: (1, 2)
    out_ref:     (B, 2)           final logits
    """
    n_rows = batch * seq_len

    # --- Fused embedding gather: one-hot(tokens) @ emb_table on the MXU. ---
    tok = tok_ref[...]                                              # (B*L, 1)
    vocab_iota = jax.lax.broadcasted_iota(jnp.int32, (n_rows, vocab), 1)
    one_hot = (tok == vocab_iota).astype(jnp.float32)               # (B*L, V)
    emb = jnp.dot(one_hot, emb_tab_ref[...],
                  preferred_element_type=jnp.float32)               # (B*L, E)

    # --- Input layer + relu : (B*L, E) @ (E, H) -> (B*L, H) ---
    x = jnp.maximum(
        jnp.dot(emb, w_in_ref[...], preferred_element_type=jnp.float32)
        + b_in_ref[...],
        0.0,
    )

    # --- Residual MLP layers (statically unrolled; num_mlp is tiny). ---
    for i in range(num_mlp):
        h = (jnp.dot(x, w_mlp_ref[i], preferred_element_type=jnp.float32)
             + b_mlp_ref[i])                                        # (1,H) bcast
        x = x + jnp.maximum(h, 0.0)

    hid = x.shape[-1]
    # permute(0,2,1) + max_pool1d over the sequence == max over the L axis.
    # (B*L, H) -> (B, L, H): only the sublane axis is factorized (L == 8 f32
    # rows == one sublane group per batch element); the lane axis is untouched.
    pooled = jnp.max(x.reshape(batch, seq_len, hid), axis=1)        # (B, H)

    # --- Fused output head (dropout is identity in eval mode). ---
    out_ref[...] = (
        jnp.dot(pooled, w_out_ref[...], preferred_element_type=jnp.float32)
        + b_out_ref[...]
    )


def textmlp_forward(tokens, emb_table, w_in, b_in, w_mlp, b_mlp, w_out, b_out):
    """tokens: (B, L) int32. Returns (B, 2) float32."""
    B, L = tokens.shape
    V, E = emb_table.shape
    H = w_in.shape[1]
    num_mlp = w_mlp.shape[0]

    # The reshape-based pooling relies on f32 activations and B*L % 8 == 0.
    assert (B * L) % 8 == 0, "B*L must be a multiple of the f32 sublane group"

    tok_flat = tokens.reshape(B * L, 1).astype(jnp.int32)   # (B*L, 1)
    b_mlp2 = b_mlp.reshape(num_mlp, 1, H)                   # keep biases 2-D

    kernel = functools.partial(textmlp_kernel, num_mlp=num_mlp,
                               batch=B, seq_len=L, vocab=V)

    vmem_spec = pl.BlockSpec(memory_space=pltpu.MemorySpace.VMEM)

    out = pl.pallas_call(
        kernel,
        out_shape=jax.ShapeDtypeStruct((B, 2), jnp.float32),
        # No grid: single invocation, every operand resident in VMEM whole
        # (total footprint ~50 KiB).
        in_specs=[vmem_spec] * 8,
        out_specs=vmem_spec,
    )(tok_flat, emb_table, w_in, b_in, w_mlp, b_mlp2, w_out, b_out)
    return out


def reference_forward(tokens, emb_table, w_in, b_in, w_mlp, b_mlp, w_out, b_out):
    """Plain-JAX reference mirroring the PyTorch forward (eval mode)."""
    x = emb_table[tokens]                                    # (B, L, E)
    x = jax.nn.relu(jnp.einsum("ble,eh->blh", x, w_in) + b_in[0])
    for i in range(w_mlp.shape[0]):
        x = x + jax.nn.relu(jnp.einsum("blh,hk->blk", x, w_mlp[i]) + b_mlp[i])
    pooled = jnp.max(x, axis=1)                              # (B, H)
    return pooled @ w_out + b_out[0]                         # (B, 2)


if __name__ == "__main__":
    # Config (small, consistent with the module):
    #   num_embeddings=64, embedding_dim=32, hidden_size=32,
    #   sentence_length=8, num_layers=3 (-> 2 residual mlp layers), batch=2.
    B, L = 2, 8
    V, E, H = 64, 32, 32
    NUM_LAYERS = 3
    NUM_MLP = NUM_LAYERS - 1

    key = jax.random.PRNGKey(0)
    keys = jax.random.split(key, 9)

    emb_table = jax.random.normal(keys[0], (V, E), jnp.float32) * 0.1
    w_in = jax.random.normal(keys[1], (E, H), jnp.float32) * 0.1
    b_in = jax.random.normal(keys[2], (1, H), jnp.float32) * 0.1
    w_mlp = jax.random.normal(keys[3], (NUM_MLP, H, H), jnp.float32) * 0.1
    b_mlp = jax.random.normal(keys[4], (NUM_MLP, H), jnp.float32) * 0.1
    w_out = jax.random.normal(keys[5], (H, 2), jnp.float32) * 0.1
    b_out = jax.random.normal(keys[6], (1, 2), jnp.float32) * 0.1
    tokens = jax.random.randint(keys[7], (B, L), 0, V, jnp.int32)

    out = textmlp_forward(tokens, emb_table, w_in, b_in, w_mlp, b_mlp,
                          w_out, b_out)
    out = jax.block_until_ready(out)

    ref = reference_forward(tokens, emb_table, w_in, b_in, w_mlp, b_mlp,
                            w_out, b_out)
    assert out.shape == (B, 2)
    # One-hot MXU gather + fused head: tolerance covers MXU pass rounding.
    assert jnp.allclose(out, ref, atol=1e-4, rtol=1e-4), (out, ref)

    print("KERNEL_OK")
</pallas_src>

<mosaic_0001>
module attributes {stable_mosaic.version = 11 : i64} {
  func.func @textmlp_kernel(%arg0: memref<16x1xi32, #tpu.memory_space<vmem>>, %arg1: memref<64x32xf32, #tpu.memory_space<vmem>>, %arg2: memref<32x32xf32, #tpu.memory_space<vmem>>, %arg3: memref<1x32xf32, #tpu.memory_space<vmem>>, %arg4: memref<2x32x32xf32, #tpu.memory_space<vmem>>, %arg5: memref<2x1x32xf32, #tpu.memory_space<vmem>>, %arg6: memref<32x2xf32, #tpu.memory_space<vmem>>, %arg7: memref<1x2xf32, #tpu.memory_space<vmem>>, %arg8: memref<2x2xf32, #tpu.memory_space<vmem>>) attributes {dimension_semantics = [], scalar_prefetch = 0 : i64, scratch_operands = 0 : i64, tpu.core_type = #tpu.core_type<tc>} {
    %c0 = arith.constant 0 : index
    %c0_0 = arith.constant 0 : index
    %0 = vector.load %arg0[%c0, %c0_0] : memref<16x1xi32, #tpu.memory_space<vmem>>, vector<16x1xi32>
    %1 = tpu.iota {dimensions = array<i32: 1>} : vector<16x64xi32>
    %2 = vector.broadcast %0 : vector<16x1xi32> to vector<16x64xi32>
    %3 = arith.cmpi eq, %2, %1 : vector<16x64xi32>
    %4 = arith.extui %3 : vector<16x64xi1> to vector<16x64xi32>
    %5 = arith.sitofp %4 : vector<16x64xi32> to vector<16x64xf32>
    %c0_1 = arith.constant 0 : index
    %c0_2 = arith.constant 0 : index
    %6 = vector.load %arg1[%c0_1, %c0_2] : memref<64x32xf32, #tpu.memory_space<vmem>>, vector<64x32xf32>
    %cst = arith.constant dense<0.000000e+00> : vector<16x32xf32>
    %7 = tpu.matmul %5, %6, %cst {dimension_numbers = #tpu.dot_dimension_numbers<[1], [0], [0], [1], [0, 0, 1, 1], [], []>} : vector<16x64xf32>, vector<64x32xf32>, vector<16x32xf32> -> vector<16x32xf32>
    %c0_3 = arith.constant 0 : index
    %c0_4 = arith.constant 0 : index
    %8 = vector.load %arg2[%c0_3, %c0_4] : memref<32x32xf32, #tpu.memory_space<vmem>>, vector<32x32xf32>
    %cst_5 = arith.constant dense<0.000000e+00> : vector<16x32xf32>
    %9 = tpu.matmul %7, %8, %cst_5 {dimension_numbers = #tpu.dot_dimension_numbers<[1], [0], [0], [1], [0, 0, 1, 1], [], []>} : vector<16x32xf32>, vector<32x32xf32>, vector<16x32xf32> -> vector<16x32xf32>
    %c0_6 = arith.constant 0 : index
    %c0_7 = arith.constant 0 : index
    %10 = vector.load %arg3[%c0_6, %c0_7] : memref<1x32xf32, #tpu.memory_space<vmem>>, vector<1x32xf32>
    %11 = vector.broadcast %10 : vector<1x32xf32> to vector<16x32xf32>
    %12 = arith.addf %9, %11 : vector<16x32xf32>
    %cst_8 = arith.constant 0.000000e+00 : f32
    %13 = vector.broadcast %cst_8 : f32 to vector<16x32xf32>
    %14 = arith.maximumf %12, %13 : vector<16x32xf32>
    %c0_9 = arith.constant 0 : index
    %c0_10 = arith.constant 0 : index
    %c0_11 = arith.constant 0 : index
    %15 = vector.load %arg4[%c0_9, %c0_10, %c0_11] : memref<2x32x32xf32, #tpu.memory_space<vmem>>, vector<1x32x32xf32>
    %16 = vector.shape_cast %15 : vector<1x32x32xf32> to vector<32x32xf32>
    %cst_12 = arith.constant dense<0.000000e+00> : vector<16x32xf32>
    %17 = tpu.matmul %14, %16, %cst_12 {dimension_numbers = #tpu.dot_dimension_numbers<[1], [0], [0], [1], [0, 0, 1, 1], [], []>} : vector<16x32xf32>, vector<32x32xf32>, vector<16x32xf32> -> vector<16x32xf32>
    %c0_13 = arith.constant 0 : index
    %c0_14 = arith.constant 0 : index
    %c0_15 = arith.constant 0 : index
    %18 = vector.load %arg5[%c0_13, %c0_14, %c0_15] : memref<2x1x32xf32, #tpu.memory_space<vmem>>, vector<1x1x32xf32>
    %19 = vector.shape_cast %18 : vector<1x1x32xf32> to vector<1x32xf32>
    %20 = vector.broadcast %19 : vector<1x32xf32> to vector<16x32xf32>
    %21 = arith.addf %17, %20 : vector<16x32xf32>
    %cst_16 = arith.constant 0.000000e+00 : f32
    %22 = vector.broadcast %cst_16 : f32 to vector<16x32xf32>
    %23 = arith.maximumf %21, %22 : vector<16x32xf32>
    %24 = arith.addf %14, %23 : vector<16x32xf32>
    %c1 = arith.constant 1 : index
    %c0_17 = arith.constant 0 : index
    %c0_18 = arith.constant 0 : index
    %25 = vector.load %arg4[%c1, %c0_17, %c0_18] : memref<2x32x32xf32, #tpu.memory_space<vmem>>, vector<1x32x32xf32>
    %26 = vector.shape_cast %25 : vector<1x32x32xf32> to vector<32x32xf32>
    %cst_19 = arith.constant dense<0.000000e+00> : vector<16x32xf32>
    %27 = tpu.matmul %24, %26, %cst_19 {dimension_numbers = #tpu.dot_dimension_numbers<[1], [0], [0], [1], [0, 0, 1, 1], [], []>} : vector<16x32xf32>, vector<32x32xf32>, vector<16x32xf32> -> vector<16x32xf32>
    %c1_20 = arith.constant 1 : index
    %c0_21 = arith.constant 0 : index
    %c0_22 = arith.constant 0 : index
    %28 = vector.load %arg5[%c1_20, %c0_21, %c0_22] : memref<2x1x32xf32, #tpu.memory_space<vmem>>, vector<1x1x32xf32>
    %29 = vector.shape_cast %28 : vector<1x1x32xf32> to vector<1x32xf32>
    %30 = vector.broadcast %29 : vector<1x32xf32> to vector<16x32xf32>
    %31 = arith.addf %27, %30 : vector<16x32xf32>
    %cst_23 = arith.constant 0.000000e+00 : f32
    %32 = vector.broadcast %cst_23 : f32 to vector<16x32xf32>
    %33 = arith.maximumf %31, %32 : vector<16x32xf32>
    %34 = arith.addf %24, %33 : vector<16x32xf32>
    %35 = vector.shape_cast %34 : vector<16x32xf32> to vector<2x8x32xf32>
    %cst_24 = arith.constant dense<0xFF800000> : vector<2x32xf32>
    %36 = vector.multi_reduction <maximumf>, %35, %cst_24 [1] : vector<2x8x32xf32> to vector<2x32xf32>
    %c0_25 = arith.constant 0 : index
    %c0_26 = arith.constant 0 : index
    %37 = vector.load %arg6[%c0_25, %c0_26] : memref<32x2xf32, #tpu.memory_space<vmem>>, vector<32x2xf32>
    %cst_27 = arith.constant dense<0.000000e+00> : vector<2x2xf32>
    %38 = tpu.matmul %36, %37, %cst_27 {dimension_numbers = #tpu.dot_dimension_numbers<[1], [0], [0], [1], [0, 0, 1, 1], [], []>} : vector<2x32xf32>, vector<32x2xf32>, vector<2x2xf32> -> vector<2x2xf32>
    %c0_28 = arith.constant 0 : index
    %c0_29 = arith.constant 0 : index
    %39 = vector.load %arg7[%c0_28, %c0_29] : memref<1x2xf32, #tpu.memory_space<vmem>>, vector<1x2xf32>
    %40 = vector.broadcast %39 : vector<1x2xf32> to vector<2x2xf32>
    %41 = arith.addf %38, %40 : vector<2x2xf32>
    %c0_30 = arith.constant 0 : index
    %c0_31 = arith.constant 0 : index
    %42 = vector.load %arg8[%c0_30, %c0_31] : memref<2x2xf32, #tpu.memory_space<vmem>>, vector<2x2xf32>
    tpu.vector_store %arg8[%c0_30, %c0_31], %41 {strides = array<i32>} : memref<2x2xf32, #tpu.memory_space<vmem>>, vector<2x2xf32>,
    return
  }
}

</mosaic_0001>

<bundles_post_ra>
// kernel: tpu_custom_call.1
= control target key start
LH: loop header
LB: loop body
LE: loop exit
PB: predicated region body
PF: predicated region fallthrough
CT: control target
= control target key end

     0   :  { %v324_v2 = vmov 0   ;;  %s474_s0 = inlined_call_operand.vmem [shape: s32[16,1], index: 0, kind: input, shape index: {}]   ;;  %s475_s1 = inlined_call_operand.vmem [shape: f32[64,32], index: 1, kind: input, shape index: {}]   ;;  %s476_s2 = inlined_call_operand.vmem [shape: f32[32,32], index: 2, kind: input, shape index: {}]   ;;  %s477_s3 = inlined_call_operand.vmem [shape: f32[1,32], index: 3, kind: input, shape index: {}]   ;;  %s478_s4 = inlined_call_operand.vmem [shape: f32[2,32,32], index: 4, kind: input, shape index: {}]   ;;  %s479_s5 = inlined_call_operand.vmem [shape: f32[2,1,32], index: 5, kind: input, shape index: {}]   ;;  %s480_s6 = inlined_call_operand.vmem [shape: f32[32,2], index: 6, kind: input, shape index: {}]   ;;  %s481_s7 = inlined_call_operand.vmem [shape: f32[1,2], index: 7, kind: input, shape index: {}]   ;;  %s482_s8 = inlined_call_operand.hbm [shape: f32[2,2], index: 8, kind: output, shape index: {}]  }
   0x1   :  { %v30_v0 = vld [vmem:[%s474_s0] sm:$0xff]  ;;  %v53_v1 = vld [vmem:[%s475_s1 + $0x38] sm:$0xff]  ;;  %293 = vset.pattern.permute.xlu0 %v324_v2  ;;  %v52_v3 = vld [vmem:[%s475_s1 + $0x30] sm:$0xff] }
   0x2   :  { %69 = vmatpush.msra.mxu0 %v53_v1  ;;  %35 = vperm.xlu0 %293, %v30_v0   ;;  %v51_v4 = vld [vmem:[%s475_s1 + $0x28] sm:$0xff]  ;;  %v50_v5 = vld [vmem:[%s475_s1 + $0x20] sm:$0xff] }
   0x4   :  { %70 = vmatpush.msra.mxu0 %v52_v3 }
   0x5   :  { %13 = vsyncpa [#allocation3], 0  ;;  %v49_v6 = vld [vmem:[%s475_s1 + $0x18] sm:$0xff]  ;;  %v31_v7 = vld [vmem:[%s474_s0 + $0x8] sm:$0xff]  ;;  %v32_v14 = vlaneseq  ;;  %vm54_vm0 = vcmask 523264   ;;  %v325_v17 = vmov 0.0  }
   0x6   :  { %71 = vmatpush.msra.mxu0 %v51_v4  ;;  %v48_v8 = vld [vmem:[%s475_s1 + $0x10] sm:$0xff]  ;;  %v47_v9 = vld [vmem:[%s475_s1 + $0x8] sm:$0xff]  ;;  %v46_v10 = vld [vmem:[%s475_s1] sm:$0xff]  ;;  %vm92_vm3 = vcmask 261120   ;;  %vm232_vm4 = vcmask 1041409   ;;  %s326_s12 = smov [#allocation2]  }
   0x7   :  { %v87_v11 = vld [vmem:[%s476_s2 + $0x18] sm:$0xff]  ;;  %v86_v12 = vld [vmem:[%s476_s2 + $0x10] sm:$0xff]  ;;  %v85_v13 = vld [vmem:[%s476_s2 + $0x8] sm:$0xff]  ;;  %v33_v15 = vand.u32 127, %v32_v14  ;;  %s263_s13 = sshll.u32 %s326_s12, 4  ;;  %s265_s15 = sshll.u32 %s482_s8, 4  ;;  %s264_s13 = int_to_ptr.vmem [resolvable:$true] %s263_s13  ;;  %s266_s15 = int_to_ptr.hbm [resolvable:$true] %s265_s15 }
   0x8   :  { %72 = vmatpush.msra.mxu0 %v50_v5  ;;  %111 = vmatpush.msra.mxu1 %v87_v11  ;;  %v84_v21 = vld [vmem:[%s476_s2] sm:$0xff]  ;;  %v127_v22 = vld [vmem:[%s478_s4 + $0x18] sm:$0xff]  ;;  %v126_v25 = vld [vmem:[%s478_s4 + $0x10] sm:$0xff]  ;;  %vm256_vm5 = vcmask 9216  }
   0x9   :  { %150 = vmatpush.msra.mxu2 %v127_v22  ;;  %v125_v26 = vld [vmem:[%s478_s4 + $0x8] sm:$0xff]  ;;  %v124_v27 = vld [vmem:[%s478_s4] sm:$0xff]  ;;  %v285_v35 = vld [vmem:[%s478_s4 + $0x38] sm:$0xff] }
   0xa   :  { %73 = vmatpush.msra.mxu0 %v49_v6  ;;  %38 = vperm.xlu0 %293, %v31_v7   ;;  %v294_v28 = vld [vmem:[%s477_s3] ss:$0 sm:$0xff]  ;;  %v284_v36 = vld [vmem:[%s478_s4 + $0x30] sm:$0xff]  ;;  %v283_v37 = vld [vmem:[%s478_s4 + $0x28] sm:$0xff] }
   0xb   :  { %112 = vmatpush.msra.mxu1 %v86_v12  ;;  %151 = vmatpush.msra.mxu2 %v126_v25  ;;  %v282_v38 = vld [vmem:[%s478_s4 + $0x20] sm:$0xff]  ;;  %v225_v48 = vld [vmem:[%s480_s6 + $0x18] sm:$0xff]  ;;  %v224_v49 = vld [vmem:[%s480_s6 + $0x10] sm:$0xff] }
   0xc   :  { %74 = vmatpush.msra.mxu0 %v48_v8  ;;  %193 = vmatpush.msra.mxu3 %v285_v35  ;;  %v295_v39 = vld [vmem:[%s479_s5] ss:$0 sm:$0xff]  ;;  %v223_v50 = vld [vmem:[%s480_s6 + $0x8] sm:$0xff]  ;;  %v296_v52 = vld [vmem:[%s479_s5 + $0x1] ss:$0 sm:$0xff] }
   0xd   :  { %113 = vmatpush.msra.mxu1 %v85_v13  ;;  %152 = vmatpush.msra.mxu2 %v125_v26  ;;  %v222_v51 = vld [vmem:[%s480_s6] sm:$0xff] }
   0xe   :  { %75 = vmatpush.msra.mxu0 %v47_v9  ;;  %194 = vmatpush.msra.mxu3 %v284_v36  ;;  %v297_v12 = vld [vmem:[%s481_s7] ss:$0 sm:$0xff] }
   0xf   :  { %114 = vmatpush.msra.mxu1 %v84_v21  ;;  %153 = vmatpush.msra.mxu2 %v124_v27 }
  0x10   :  { %76 = vmatpush.msra.mxu0 %v46_v10  ;;  %195 = vmatpush.msra.mxu3 %v283_v37 }
  0x11   :  { %248 = vmatpush.msrb.mxu1 %v225_v48 }
  0x12   :  { %196 = vmatpush.msra.mxu3 %v282_v38 }
  0x13   :  { %249 = vmatpush.msrb.mxu1 %v224_v49 }
  0x15   :  { %250 = vmatpush.msrb.mxu1 %v223_v50 }
  0x17   :  { %251 = vmatpush.msrb.mxu1 %v222_v51 }
  0x74   :  { %v36_v16 = vpop.permute.xlu0 %35 }
  0x75   :  { %vm40_vm1 = vcmp.eq.s32.totalorder %v36_v16, %v33_v15 }
  0x76   :  { %v274_v18 = vsel %vm40_vm1, 1.0, %v325_v17 }
  0x77   :  { %276 = vmatmul.msk.f32.vlgmr.msra.gmra.mxu0 %vm54_vm0, %v274_v18 }
  0x7c   :  { %v39_v19 = vpop.permute.xlu0 %38 }
  0x7d   :  { %vm41_vm2 = vcmp.eq.s32.totalorder %v39_v19, %v33_v15 }
  0x7e   :  { %v275_v20 = vsel %vm41_vm2, 1.0, %v325_v17 }
  0x7f   :  { %277 = vmatmul.msk.f32.gmra.mxu0 %vm54_vm0, %v275_v20 }
  0xf4   :  { %v78_v23 = vpop.f32.mrf.mxu0 }
  0xf5   :  { %278 = vmatmul.msk.f32.vlgmr.msra.gmra.mxu1 %vm92_vm3, %v78_v23 }
  0xfc   :  { %v81_v24 = vpop.f32.mrf.mxu0 }
  0xfd   :  { %279 = vmatmul.msk.f32.gmra.mxu1 %vm92_vm3, %v81_v24 }
 0x172   :  { %v116_v29 = vpop.f32.mrf.mxu1 }
 0x173   :  { %v117_v30 = vadd.f32 %v294_v28, %v116_v29 }
 0x175   :  { %v122_v31 = vmax.f32 %v117_v30, 0.0 }
 0x177   :  { %280 = vmatmul.msk.f32.vlgmr.msra.gmra.mxu2 %vm92_vm3, %v122_v31 }
 0x17a   :  { %v119_v32 = vpop.f32.mrf.mxu1 }
 0x17b   :  { %v120_v33 = vadd.f32 %v294_v28, %v119_v32 }
 0x17d   :  { %v123_v34 = vmax.f32 %v120_v33, 0.0 }
 0x17f   :  { %281 = vmatmul.msk.f32.gmra.mxu2 %vm92_vm3, %v123_v34 }
 0x1fa   :  { %v155_v40 = vpop.f32.mrf.mxu2 }
 0x1fb   :  { %v156_v41 = vadd.f32 %v295_v39, %v155_v40 }
 0x1fd   :  { %v161_v42 = vmax.f32 %v156_v41, 0.0 }
 0x1ff   :  { %v163_v43 = vadd.f32 %v161_v42, %v122_v31 }
 0x201   :  { %287 = vmatmul.msk.f32.vlgmr.msra.gmra.mxu3 %vm92_vm3, %v163_v43 }
 0x202   :  { %v158_v44 = vpop.f32.mrf.mxu2 }
 0x203   :  { %v159_v45 = vadd.f32 %v295_v39, %v158_v44 }
 0x205   :  { %v162_v46 = vmax.f32 %v159_v45, 0.0 }
 0x207   :  { %v164_v47 = vadd.f32 %v162_v46, %v123_v34 }
 0x209   :  { %288 = vmatmul.msk.f32.gmra.mxu3 %vm92_vm3, %v164_v47 }
 0x284   :  { %v198_v53 = vpop.f32.mrf.mxu3 }
 0x285   :  { %v199_v54 = vadd.f32 %v296_v52, %v198_v53 }
 0x287   :  { %v204_v55 = vmax.f32 %v199_v54, 0.0 }
 0x289   :  { %v206_v56 = vadd.f32 %v204_v55, %v163_v43 }
 0x28b   :  { %v208_v57 = vsel %vm92_vm3, %v206_v56, -inf }
 0x28c   :  { %v209_v58 = vrot.slane %v208_v57, 4  ;;  %v201_v59 = vpop.f32.mrf.mxu3 }
 0x28d   :  { %v202_v60 = vadd.f32 %v296_v52, %v201_v59 }
 0x28e   :  { %v210_v61 = vmax.f32 %v208_v57, %v209_v58 }
 0x28f   :  { %v205_v62 = vmax.f32 %v202_v60, 0.0 }
 0x290   :  { %v211_v0 = vrot.slane %v210_v61, 2 }
 0x291   :  { %v207_v63 = vadd.f32 %v205_v62, %v164_v47 }
 0x292   :  { %v212_v3 = vmax.f32 %v210_v61, %v211_v0 }
 0x293   :  { %v215_v1 = vsel %vm92_vm3, %v207_v63, -inf }
 0x294   :  { %v216_v2 = vrot.slane %v215_v1, 4  ;;  %v213_v7 = vrot.slane %v212_v3, 1 }
 0x296   :  { %v217_v4 = vmax.f32 %v215_v1, %v216_v2  ;;  %v214_v9 = vmax.f32 %v212_v3, %v213_v7 }
 0x298   :  { %v218_v5 = vrot.slane %v217_v4, 2 }
 0x29a   :  { %v219_v6 = vmax.f32 %v217_v4, %v218_v5 }
 0x29c   :  { %v220_v8 = vrot.slane %v219_v6, 1 }
 0x29e   :  { %v221_v10 = vmax.f32 %v219_v6, %v220_v8 }
 0x2a0   :  { %v233_v11 = vsel %vm232_vm4, %v221_v10, %v214_v9 }
 0x2a1   :  { %289 = vmatmul.msk.f32.vlgmr.msrb.gmra.mxu1 %vm92_vm3, %v233_v11 }
 0x31e   :  { %v253_v13 = vpop.f32.mrf.mxu1 }
 0x31f   :  { %v254_v14 = vadd.f32 %v297_v12, %v253_v13 }
 0x321   :  { %257 = vst.msk [vmem:[#allocation2] sm:$0x3] %vm256_vm5, %v254_v14 }
 0x322   :  { %268 = dma.vmem_to_hbm [thread:$0]  %s264_s13, 32, %s266_s15, [#allocation3]  }
 0x323   :  { %322 = dma.done.wait [#allocation3], 32  }
 0x324   :  { %323 = vsyncadd [#allocation3], 4294967264 }
 0x325   :  { %273 = vsyncpa [#allocation3], 1 }

</bundles_post_ra>
